<compile_context>
chip_gen: v7x
topology: tpu7x:2x2x1
jax: 0.10.0
libtpu: 0.0.40
codegen_flags: <defaults>
</compile_context>

<pallas_src>
import jax
import jax.numpy as jnp
from jax.experimental import pallas as pl
from jax.experimental.pallas import tpu as pltpu


def ffn_kernel(x_ref, w1_ref, b1_ref, w2_ref, b2_ref, o_ref):
    x = x_ref[...].astype(jnp.float32)

    # torch.nn.functional.normalize: x / max(||x||_2 along dim=1, 1e-12).
    # rsqrt(max(sq, 1e-24)) == 1 / max(||x||, 1e-12); rsqrt runs on the EUP.
    sq = jnp.sum(x * x, axis=-1, keepdims=True)
    xn = x * jax.lax.rsqrt(jnp.maximum(sq, 1e-24))

    # fc1 + ReLU  (bf16 MXU inputs, f32 accumulate)
    h = jnp.dot(xn.astype(w1_ref.dtype), w1_ref[...],
                preferred_element_type=jnp.float32) + b1_ref[...]
    h = jnp.maximum(h, 0.0)

    # fc2
    out = jnp.dot(h.astype(w2_ref.dtype), w2_ref[...],
                  preferred_element_type=jnp.float32) + b2_ref[...]
    o_ref[...] = out.astype(o_ref.dtype)


def _round_up(n, m):
    return ((n + m - 1) // m) * m


def make_ffn(w1, b1, w2, b2, *, matmul_dtype=jnp.bfloat16, out_dtype=jnp.float32):
    """Build a jitted forward fn.  w1: (obs, hid); b1: (1, hid); w2: (hid, act); b2: (1, act).

    Weight padding + casting happens ONCE here (not per call).
    """
    obs, hid = w1.shape
    act = w2.shape[1]

    # Lane-dense padding: every feature dim -> multiple of 128.  Zero padding is
    # exact: padded lanes contribute 0 to the norm and to both matmuls.
    obs_p = _round_up(obs, 128)
    hid_p = _round_up(hid, 128)
    act_p = _round_up(act, 128)

    w1p = jnp.pad(w1, ((0, obs_p - obs), (0, hid_p - hid))).astype(matmul_dtype)
    b1p = jnp.pad(b1.reshape(1, hid).astype(jnp.float32), ((0, 0), (0, hid_p - hid)))
    w2p = jnp.pad(w2, ((0, hid_p - hid), (0, act_p - act))).astype(matmul_dtype)
    b2p = jnp.pad(b2.reshape(1, act).astype(jnp.float32), ((0, 0), (0, act_p - act)))

    w_itemsize = jnp.dtype(matmul_dtype).itemsize
    out_itemsize = jnp.dtype(out_dtype).itemsize
    # Single-buffered (Buffered(1)) weights/biases.
    weight_bytes = (obs_p * hid_p + hid_p * act_p) * w_itemsize + (hid_p + act_p) * 4

    def _resident(shape):
        # Constant index_map -> stays VMEM-resident; one buffer is enough.
        return pl.BlockSpec(shape, lambda i: (0, 0),
                            pipeline_mode=pl.Buffered(buffer_count=1))

    @jax.jit
    def forward(x):
        B = x.shape[0]
        # Big M for the MXU; cap at 128 rows/tile so batches > 128 give >= 2
        # "parallel" grid steps (both v7x TensorCores).  Round to 16 for bf16
        # sublane packing of the matmul operand at tiny batches.
        tile_b = min(_round_up(B, 16), 128)
        grid_b = pl.cdiv(B, tile_b)

        # Pad features only (keeps garbage lanes out of the row norm); the
        # batch axis is handled by a partial last tile, no padding copy.
        xp = jnp.pad(x.astype(jnp.float32), ((0, 0), (0, obs_p - obs)))

        vmem_bytes = (
            2 * tile_b * obs_p * 4                 # x tiles (double buffered)
            + 2 * tile_b * act_p * out_itemsize    # out tiles (double buffered)
            + weight_bytes                         # single-buffered weights/biases
            + tile_b * (obs_p + hid_p + act_p) * 4 # in-kernel f32 temporaries
        )
        vmem_limit = min(max(int(1.25 * vmem_bytes) + (2 << 20), 32 << 20), 128 << 20)

        out_p = pl.pallas_call(
            ffn_kernel,
            out_shape=jax.ShapeDtypeStruct((B, act_p), out_dtype),
            grid_spec=pltpu.PrefetchScalarGridSpec(
                num_scalar_prefetch=0,
                grid=(grid_b,),
                in_specs=[
                    pl.BlockSpec((tile_b, obs_p), lambda i: (i, 0)),  # x tile (streamed)
                    _resident((obs_p, hid_p)),                        # W1
                    _resident((1, hid_p)),                            # b1
                    _resident((hid_p, act_p)),                        # W2
                    _resident((1, act_p)),                            # b2
                ],
                out_specs=pl.BlockSpec((tile_b, act_p), lambda i: (i, 0)),
            ),
            compiler_params=pltpu.CompilerParams(
                dimension_semantics=("parallel",),
                vmem_limit_bytes=vmem_limit,
            ),
        )(xp, w1p, b1p, w2p, b2p)

        # Slice the lane-dense output slab back to the logical shape.
        return out_p[:, :act]

    return forward


def reference(x, w1, b1, w2, b2):
    xn = x / jnp.maximum(jnp.linalg.norm(x, axis=1, keepdims=True), 1e-12)
    h = jnp.maximum(xn @ w1 + b1, 0.0)
    return h @ w2 + b2


if __name__ == "__main__":
    # Small shapes consistent with the module's forward: (batch, observation_size),
    # module default hidden_size=200.
    batch, observation_size, hidden_size, n_actions = 16, 32, 200, 8

    key = jax.random.PRNGKey(0)
    kx, k1, kb1, k2, kb2 = jax.random.split(key, 5)

    x = jax.random.normal(kx, (batch, observation_size), dtype=jnp.float32)

    # Deterministic parameter init (Xavier-uniform-like scale), stored (in, out).
    lim1 = (6.0 / (observation_size + hidden_size)) ** 0.5
    w1 = jax.random.uniform(k1, (observation_size, hidden_size),
                            minval=-lim1, maxval=lim1, dtype=jnp.float32)
    b1 = jax.random.uniform(kb1, (1, hidden_size),
                            minval=-0.1, maxval=0.1, dtype=jnp.float32)
    lim2 = (6.0 / (hidden_size + n_actions)) ** 0.5
    w2 = jax.random.uniform(k2, (hidden_size, n_actions),
                            minval=-lim2, maxval=lim2, dtype=jnp.float32)
    b2 = jax.random.uniform(kb2, (1, n_actions),
                            minval=-0.1, maxval=0.1, dtype=jnp.float32)

    ffn = make_ffn(w1, b1, w2, b2)        # pads/casts weights once
    out = jax.block_until_ready(ffn(x))   # jitted: pad-x + kernel + slice

    ref = reference(x, w1, b1, w2, b2)
    assert out.shape == (batch, n_actions)
    # Tolerance relaxed for bf16 MXU inputs (f32 accumulation keeps error ~1e-3).
    assert jnp.allclose(out, ref, atol=2e-2, rtol=2e-2), (
        float(jnp.max(jnp.abs(out - ref))))

    print("KERNEL_OK")
</pallas_src>

<mosaic_0001>
module attributes {stable_mosaic.version = 11 : i64} {
  func.func @ffn_kernel(%arg0: i32, %arg1: memref<16x128xf32, #tpu.memory_space<vmem>>, %arg2: memref<128x256xbf16, #tpu.memory_space<vmem>>, %arg3: memref<1x256xf32, #tpu.memory_space<vmem>>, %arg4: memref<256x128xbf16, #tpu.memory_space<vmem>>, %arg5: memref<1x128xf32, #tpu.memory_space<vmem>>, %arg6: memref<16x128xf32, #tpu.memory_space<vmem>>) attributes {dimension_semantics = [#tpu.dimension_semantics<parallel>], iteration_bounds = array<i64: 1>, scalar_prefetch = 0 : i64, scratch_operands = 0 : i64, tpu.core_type = #tpu.core_type<tc>, window_params = [{transform_indices = @transform_0, window_bounds = array<i64: 16, 128>}, {pipeline_mode = #tpu.pipeline_mode<synchronous>, transform_indices = @transform_1, window_bounds = array<i64: 128, 256>}, {pipeline_mode = #tpu.pipeline_mode<synchronous>, transform_indices = @transform_2, window_bounds = array<i64: 1, 256>}, {pipeline_mode = #tpu.pipeline_mode<synchronous>, transform_indices = @transform_3, window_bounds = array<i64: 256, 128>}, {pipeline_mode = #tpu.pipeline_mode<synchronous>, transform_indices = @transform_4, window_bounds = array<i64: 1, 128>}, {transform_indices = @transform_5, window_bounds = array<i64: 16, 128>}]} {
    %c0 = arith.constant 0 : index
    %c0_0 = arith.constant 0 : index
    %0 = vector.load %arg1[%c0, %c0_0] : memref<16x128xf32, #tpu.memory_space<vmem>>, vector<16x128xf32>
    %1 = arith.mulf %0, %0 : vector<16x128xf32>
    %cst = arith.constant dense<0.000000e+00> : vector<16xf32>
    %2 = vector.multi_reduction <add>, %1, %cst [1] : vector<16x128xf32> to vector<16xf32>
    %3 = vector.shape_cast %2 : vector<16xf32> to vector<16x1xf32>
    %cst_1 = arith.constant 1.000000e-24 : f32
    %4 = vector.broadcast %cst_1 : f32 to vector<16x1xf32>
    %5 = arith.maximumf %3, %4 : vector<16x1xf32>
    %6 = math.rsqrt %5 : vector<16x1xf32>
    %7 = vector.broadcast %6 : vector<16x1xf32> to vector<16x128xf32>
    %8 = arith.mulf %0, %7 : vector<16x128xf32>
    %9 = arith.truncf %8 : vector<16x128xf32> to vector<16x128xbf16>
    %c0_2 = arith.constant 0 : index
    %c0_3 = arith.constant 0 : index
    %10 = vector.load %arg2[%c0_2, %c0_3] : memref<128x256xbf16, #tpu.memory_space<vmem>>, vector<128x256xbf16>
    %cst_4 = arith.constant dense<0.000000e+00> : vector<16x256xf32>
    %11 = tpu.matmul %9, %10, %cst_4 {dimension_numbers = #tpu.dot_dimension_numbers<[1], [0], [0], [1], [0, 0, 1, 1], [], []>} : vector<16x128xbf16>, vector<128x256xbf16>, vector<16x256xf32> -> vector<16x256xf32>
    %c0_5 = arith.constant 0 : index
    %c0_6 = arith.constant 0 : index
    %12 = vector.load %arg3[%c0_5, %c0_6] : memref<1x256xf32, #tpu.memory_space<vmem>>, vector<1x256xf32>
    %13 = vector.broadcast %12 : vector<1x256xf32> to vector<16x256xf32>
    %14 = arith.addf %11, %13 : vector<16x256xf32>
    %cst_7 = arith.constant 0.000000e+00 : f32
    %15 = vector.broadcast %cst_7 : f32 to vector<16x256xf32>
    %16 = arith.maximumf %14, %15 : vector<16x256xf32>
    %17 = arith.truncf %16 : vector<16x256xf32> to vector<16x256xbf16>
    %c0_8 = arith.constant 0 : index
    %c0_9 = arith.constant 0 : index
    %18 = vector.load %arg4[%c0_8, %c0_9] : memref<256x128xbf16, #tpu.memory_space<vmem>>, vector<256x128xbf16>
    %cst_10 = arith.constant dense<0.000000e+00> : vector<16x128xf32>
    %19 = tpu.matmul %17, %18, %cst_10 {dimension_numbers = #tpu.dot_dimension_numbers<[1], [0], [0], [1], [0, 0, 1, 1], [], []>} : vector<16x256xbf16>, vector<256x128xbf16>, vector<16x128xf32> -> vector<16x128xf32>
    %c0_11 = arith.constant 0 : index
    %c0_12 = arith.constant 0 : index
    %20 = vector.load %arg5[%c0_11, %c0_12] : memref<1x128xf32, #tpu.memory_space<vmem>>, vector<1x128xf32>
    %21 = vector.broadcast %20 : vector<1x128xf32> to vector<16x128xf32>
    %22 = arith.addf %19, %21 : vector<16x128xf32>
    %c0_13 = arith.constant 0 : index
    %c0_14 = arith.constant 0 : index
    %23 = vector.load %arg6[%c0_13, %c0_14] : memref<16x128xf32, #tpu.memory_space<vmem>>, vector<16x128xf32>
    tpu.vector_store %arg6[%c0_13, %c0_14], %22 {strides = array<i32>} : memref<16x128xf32, #tpu.memory_space<vmem>>, vector<16x128xf32>,
    return
  }
  func.func @transform_0(%arg0: i32) -> (i32, i32) {
    %c0_i32 = arith.constant 0 : i32
    %c0_i32_0 = arith.constant 0 : i32
    return %arg0, %c0_i32 : i32, i32
  }
  func.func @transform_1(%arg0: i32) -> (i32, i32) {
    %c0_i32 = arith.constant 0 : i32
    %c0_i32_0 = arith.constant 0 : i32
    %c0_i32_1 = arith.constant 0 : i32
    return %c0_i32, %c0_i32_0 : i32, i32
  }
  func.func @transform_2(%arg0: i32) -> (i32, i32) {
    %c0_i32 = arith.constant 0 : i32
    %c0_i32_0 = arith.constant 0 : i32
    %c0_i32_1 = arith.constant 0 : i32
    return %c0_i32, %c0_i32_0 : i32, i32
  }
  func.func @transform_3(%arg0: i32) -> (i32, i32) {
    %c0_i32 = arith.constant 0 : i32
    %c0_i32_0 = arith.constant 0 : i32
    %c0_i32_1 = arith.constant 0 : i32
    return %c0_i32, %c0_i32_0 : i32, i32
  }
  func.func @transform_4(%arg0: i32) -> (i32, i32) {
    %c0_i32 = arith.constant 0 : i32
    %c0_i32_0 = arith.constant 0 : i32
    %c0_i32_1 = arith.constant 0 : i32
    return %c0_i32, %c0_i32_0 : i32, i32
  }
  func.func @transform_5(%arg0: i32) -> (i32, i32) {
    %c0_i32 = arith.constant 0 : i32
    %c0_i32_0 = arith.constant 0 : i32
    return %arg0, %c0_i32 : i32, i32
  }
}

</mosaic_0001>

<bundles_post_ra>
// kernel: forward.1
= control target key start
LH: loop header
LB: loop body
LE: loop exit
PB: predicated region body
PF: predicated region fallthrough
CT: control target
= control target key end

     0   :  { %v475_v17 = vmov 0   ;;  %v54_v46 = vlaneseq  ;;  %s630_s0 = inlined_call_operand.vmem [shape: f32[16,128], index: 0, kind: input, shape index: {}]   ;;  %s631_s1 = inlined_call_operand.vmem [shape: bf16[128,256], index: 1, kind: input, shape index: {}]   ;;  %s632_s3 = inlined_call_operand.vmem [shape: bf16[256,128], index: 3, kind: input, shape index: {}]   ;;  %s633_s2 = inlined_call_operand.vmem [shape: f32[1,256], index: 2, kind: input, shape index: {}]   ;;  %s634_s4 = inlined_call_operand.vmem [shape: f32[1,128], index: 4, kind: input, shape index: {}]   ;;  %s635_s5 = inlined_call_operand.vmem [shape: f32[16,128], index: 5, kind: output, shape index: {}]  }
   0x1   :  { %v509_v0 = vld [vmem:[%s630_s0] sm:$0xff]  ;;  %v514_v1 = vld [vmem:[%s630_s0 + $0x8] sm:$0xff]  ;;  %v434_v5 = vld [vmem:[%s631_s1 + $0x14] ss:$8 sps:$4 sm:$0xff]   ;;  %176 = vmatprep.mubr.bf16.mxu0 %v475_v17 }
   0x2   :  { %v23_v2 = vmul.f32 %v509_v0, %v509_v0  ;;  %v431_v3 = vld [vmem:[%s631_s1 + $0x4] ss:$8 sps:$4 sm:$0xff]   ;;  %v433_v4 = vld [vmem:[%s631_s1] ss:$8 sps:$4 sm:$0xff]   ;;  %v24_v6 = vmul.f32 %v514_v1, %v514_v1  ;;  %v436_v7 = vld [vmem:[%s631_s1 + $0x10] ss:$8 sps:$4 sm:$0xff]  }
   0x3   :  { %144 = vmatprep.subr.bf16.mxu0 %v431_v3  ;;  %v437_v8 = vld [vmem:[%s631_s1 + $0x24] ss:$8 sps:$4 sm:$0xff]   ;;  %v439_v9 = vld [vmem:[%s631_s1 + $0x20] ss:$8 sps:$4 sm:$0xff]   ;;  %v440_v10 = vld [vmem:[%s631_s1 + $0x34] ss:$8 sps:$4 sm:$0xff]  }
   0x4   :  { %25 = vadd.xlane.f32.xlu0 %v23_v2  ;;  %145 = vmatpush1.bf16.msra.mxu0 %v433_v4  ;;  %v442_v11 = vld [vmem:[%s631_s1 + $0x30] ss:$8 sps:$4 sm:$0xff]   ;;  %v443_v12 = vld [vmem:[%s631_s1 + $0x44] ss:$8 sps:$4 sm:$0xff]   ;;  %v445_v13 = vld [vmem:[%s631_s1 + $0x40] ss:$8 sps:$4 sm:$0xff]  }
   0x5   :  { %146 = vmatprep.subr.bf16.mxu0 %v434_v5  ;;  %v446_v14 = vld [vmem:[%s631_s1 + $0x54] ss:$8 sps:$4 sm:$0xff]   ;;  %v448_v15 = vld [vmem:[%s631_s1 + $0x50] ss:$8 sps:$4 sm:$0xff]   ;;  %v449_v16 = vld [vmem:[%s631_s1 + $0x64] ss:$8 sps:$4 sm:$0xff]  }
   0x6   :  { %v451_v18 = vld [vmem:[%s631_s1 + $0x60] ss:$8 sps:$4 sm:$0xff]   ;;  %v452_v19 = vld [vmem:[%s631_s1 + $0x74] ss:$8 sps:$4 sm:$0xff]   ;;  %v454_v20 = vld [vmem:[%s631_s1 + $0x70] ss:$8 sps:$4 sm:$0xff]  }
   0x7   :  { %v455_v21 = vld [vmem:[%s632_s3 + $0x40] sm:$0xff]   ;;  %v457_v23 = vld [vmem:[%s632_s3 + $0x48] sm:$0xff]   ;;  %v459_v25 = vld [vmem:[%s632_s3 + $0x50] sm:$0xff]   ;;  %v55_v47 = vshrl.u32 %v54_v46, 7 }
   0x8   :  { %27 = vadd.xlane.f32.xlu0 %v24_v6  ;;  %147 = vmatpush1.bf16.msra.mxu0 %v436_v7  ;;  %v456_v22 = vld [vmem:[%s632_s3] sm:$0xff]   ;;  %v458_v24 = vld [vmem:[%s632_s3 + $0x8] sm:$0xff]   ;;  %v460_v26 = vld [vmem:[%s632_s3 + $0x10] sm:$0xff]  }
   0x9   :  { %148 = vmatprep.subr.bf16.mxu0 %v437_v8  ;;  %408 = vmatprep.subr.bf16.mxu1 %v455_v21  ;;  %v461_v27 = vld [vmem:[%s632_s3 + $0x58] sm:$0xff]   ;;  %v463_v29 = vld [vmem:[%s632_s3 + $0x60] sm:$0xff]   ;;  %v465_v31 = vld [vmem:[%s632_s3 + $0x68] sm:$0xff]   ;;  %v56_v48 = vsub.s32 0, %v55_v47  ;;  %v60_v50 = vsub.s32 1, %v55_v47 }
   0xa   :  { %409 = vmatpush3.bf16.msra.mxu1 %v456_v22  ;;  %v462_v28 = vld [vmem:[%s632_s3 + $0x18] sm:$0xff]   ;;  %v464_v30 = vld [vmem:[%s632_s3 + $0x20] sm:$0xff]   ;;  %v466_v41 = vld [vmem:[%s632_s3 + $0x28] sm:$0xff]  }
   0xb   :  { %410 = vmatprep.subr.bf16.mxu1 %v457_v23  ;;  %v467_v42 = vld [vmem:[%s632_s3 + $0x70] sm:$0xff]   ;;  %v469_v44 = vld [vmem:[%s632_s3 + $0x78] sm:$0xff]   ;;  %v52_v49 = vld [vmem:[%s633_s2] sm:$0x3] }
   0xc   :  { %149 = vmatpush1.bf16.msra.mxu0 %v439_v9  ;;  %v468_v43 = vld [vmem:[%s632_s3 + $0x30] sm:$0xff]   ;;  %v470_v45 = vld [vmem:[%s632_s3 + $0x38] sm:$0xff]   ;;  %v57_v51 = vrot.slane %v52_v49, %v56_v48  ;;  %v61_v52 = vrot.slane %v52_v49, %v60_v50  ;;  %v391_v4 = vld [vmem:[%s634_s4] ss:$0 sm:$0xff] }
   0xd   :  { %150 = vmatprep.subr.bf16.mxu0 %v440_v10 }
   0xe   :  { %411 = vmatpush3.bf16.msra.mxu1 %v458_v24 }
   0xf   :  { %412 = vmatprep.subr.bf16.mxu1 %v459_v25 }
  0x10   :  { %151 = vmatpush1.bf16.msra.mxu0 %v442_v11 }
  0x11   :  { %152 = vmatprep.subr.bf16.mxu0 %v443_v12 }
  0x12   :  { %413 = vmatpush3.bf16.msra.mxu1 %v460_v26 }
  0x13   :  { %414 = vmatprep.subr.bf16.mxu1 %v461_v27 }
  0x14   :  { %153 = vmatpush1.bf16.msra.mxu0 %v445_v13 }
  0x15   :  { %154 = vmatprep.subr.bf16.mxu0 %v446_v14 }
  0x16   :  { %415 = vmatpush3.bf16.msra.mxu1 %v462_v28 }
  0x17   :  { %416 = vmatprep.subr.bf16.mxu1 %v463_v29 }
  0x18   :  { %155 = vmatpush1.bf16.msra.mxu0 %v448_v15 }
  0x19   :  { %156 = vmatprep.subr.bf16.mxu0 %v449_v16 }
  0x1a   :  { %417 = vmatpush3.bf16.msra.mxu1 %v464_v30 }
  0x1b   :  { %418 = vmatprep.subr.bf16.mxu1 %v465_v31 }
  0x1c   :  { %157 = vmatpush1.bf16.msra.mxu0 %v451_v18 }
  0x1d   :  { %158 = vmatprep.subr.bf16.mxu0 %v452_v19 }
  0x1e   :  { %419 = vmatpush3.bf16.msra.mxu1 %v466_v41 }
  0x1f   :  { %420 = vmatprep.subr.bf16.mxu1 %v467_v42 }
  0x20   :  { %159 = vmatpush1.bf16.msra.mxu0 %v454_v20 }
  0x22   :  { %421 = vmatpush3.bf16.msra.mxu1 %v468_v43 }
  0x23   :  { %422 = vmatprep.subr.bf16.mxu1 %v469_v44 }
  0x26   :  { %423 = vmatpush3.bf16.msra.mxu1 %v470_v45 }
  0x91   :  { %v26_v32 = vpop.xlane.xlu0 %25 }
  0x92   :  { %v29_v33 = vmax.f32 %v26_v32, 1e-24 }
  0x94   :  { %471 = vrsqrt.f32 %v29_v33 }
  0x95   :  { %v28_v34 = vpop.xlane.xlu0 %27 }
  0x96   :  { %v30_v35 = vmax.f32 %v28_v34, 1e-24 }
  0x98   :  { %473 = vrsqrt.f32 %v30_v35 }
  0x9e   :  { %v472_v36 = vpop.eup %471 }
  0x9f   :  { %v33_v38 = vmul.f32 %v472_v36, %v509_v0 }
  0xa2   :  { %v474_v37 = vpop.eup %473 }
  0xa3   :  { %v34_v39 = vmul.f32 %v474_v37, %v514_v1 }
  0xa5   :  { %v35_v40 = vpack.c.bf16 %v34_v39, %v33_v38 }
  0xa7   :  { %177 = vmatmul.mubr.bf16.vlgmr.msra.gmra.mrb[0].mxu0 %v35_v40 }
 0x17a   :  { %v178_v53 = vpop.f32.mrb[0].mxu0 }
 0x17b   :  { %v179_v54 = vadd.f32 %v178_v53, %v57_v51  ;;  %v180_v55 = vpop.f32.mrb[1].mxu0 }
 0x17c   :  { %v181_v56 = vadd.f32 %v180_v55, %v61_v52  ;;  %v182_v57 = vpop.f32.mrb[2].mxu0 }
 0x17d   :  { %v183_v58 = vadd.f32 %v182_v57, %v57_v51  ;;  %v184_v59 = vpop.f32.mrb[3].mxu0  ;;  %v187_v61 = vmax.f32 %v179_v54, 0.0 }
 0x17e   :  { %v185_v60 = vadd.f32 %v184_v59, %v61_v52  ;;  %v188_v63 = vmax.f32 %v181_v56, 0.0 }
 0x17f   :  { %v189_v62 = vmax.f32 %v183_v58, 0.0 }
 0x180   :  { %v190_v0 = vmax.f32 %v185_v60, 0.0 }
 0x181   :  { %v191_v1 = vpack.c.bf16 %v189_v62, %v187_v61 }
 0x182   :  { %v192_v2 = vpack.c.bf16 %v190_v0, %v188_v63 }
 0x184   :  { %360 = vmatprep.mubr.bf16.mxu1 %v192_v2 }
 0x185   :  { %361 = vmatmul.mubr.bf16.vlgmr.msra.gmra.mrb[0].mxu1 %v191_v1 }
 0x258   :  { %v424_v3 = vpop.f32.mrb[0].mxu1 }
 0x259   :  { %v425_v5 = vpop.f32.mrb[1].mxu1 }
 0x25a   :  { %v426_v6 = vadd.f32 %v425_v5, %v424_v3  ;;  %v427_v7 = vpop.f32.mrb[2].mxu1 }
 0x25b   :  { %v428_v8 = vpop.f32.mrb[3].mxu1 }
 0x25c   :  { %v363_v9 = vadd.f32 %v426_v6, %v391_v4  ;;  %v429_v10 = vadd.f32 %v428_v8, %v427_v7 }
 0x25e   :  { %369 = vst [vmem:[%s635_s5] sm:$0xff] %v363_v9  ;;  %v366_v11 = vadd.f32 %v429_v10, %v391_v4 }
 0x260   :  { %370 = vst [vmem:[%s635_s5 + $0x8] sm:$0xff] %v366_v11 }

</bundles_post_ra>
